<compile_context>
chip_gen: v5e
topology: v5e:2x2
jax: 0.10.0
libtpu: 0.0.40
codegen_flags: <defaults>
</compile_context>

<pallas_src>
import functools

import jax
import jax.numpy as jnp
from jax.experimental import pallas as pl
from jax.experimental.pallas import tpu as pltpu


def _round_up(n: int, m: int) -> int:
    return ((n + m - 1) // m) * m


def ffnn_kernel(x_ref, w1_ref, b1_ref, w2_ref, b2_ref,
                w3_ref, b3_ref, w4_ref, b4_ref, o_ref):
    """Fused MLP for one batch tile: (Linear+ReLU) x3 -> Linear(->1).

    Matmul inputs are bf16 (MXU fast path); accumulation / bias add / ReLU are
    f32.  Weights & biases are VMEM-resident across the whole grid.
    """
    x = x_ref[...]                                             # (TB, D) bf16

    h = jnp.dot(x, w1_ref[...], preferred_element_type=jnp.float32) + b1_ref[...]
    h = jnp.maximum(h, 0.0).astype(jnp.bfloat16)

    h = jnp.dot(h, w2_ref[...], preferred_element_type=jnp.float32) + b2_ref[...]
    h = jnp.maximum(h, 0.0).astype(jnp.bfloat16)

    h = jnp.dot(h, w3_ref[...], preferred_element_type=jnp.float32) + b3_ref[...]
    h = jnp.maximum(h, 0.0).astype(jnp.bfloat16)

    out = jnp.dot(h, w4_ref[...], preferred_element_type=jnp.float32) + b4_ref[0, 0]
    # TODO(synk): a lane-dense (1, TILE_B) output layout would avoid masked
    #             width-1 stores, but write volume is negligible vs. x reads.
    o_ref[...] = out.astype(o_ref.dtype)


@functools.partial(jax.jit, static_argnames=("tile_b",))
def feedforward_net(x, params, *, tile_b=512):
    """x: (B, input_dim) float32 -> (B,) float32 (squeeze(-1) of final Linear)."""
    w1, b1, w2, b2, w3, b3, w4, b4 = params
    B, D = x.shape
    H = w1.shape[1]

    # Batch tile: multiple of 8 sublanes, never larger than the (padded) batch.
    tb = min(tile_b, _round_up(B, 8))
    b_pad = _round_up(B, tb)
    if b_pad != B:
        x = jnp.pad(x, ((0, b_pad - B), (0, 0)))

    # Cast matmul operands to bf16 once in the wrapper (not per grid step).
    xb = x.astype(jnp.bfloat16)
    w1b, w2b, w3b, w4b = (w.astype(jnp.bfloat16) for w in (w1, w2, w3, w4))

    grid = (b_pad // tb,)
    resident = lambda i: (0, 0)  # weights / biases: same block every step

    flops = 2 * b_pad * (D * H + H * H + H * H + H * 1)
    bytes_accessed = (b_pad * D * 2 + b_pad * 4            # x (bf16) + out (f32)
                      + (D * H + 2 * H * H + H) * 2        # bf16 weights
                      + 3 * H * 4 + 4)                     # f32 biases

    out = pl.pallas_call(
        ffnn_kernel,
        out_shape=jax.ShapeDtypeStruct((b_pad, 1), jnp.float32),
        grid=grid,
        in_specs=[
            pl.BlockSpec((tb, D), lambda i: (i, 0)),       # x: streamed tiles
            pl.BlockSpec((D, H), resident),                # w1
            pl.BlockSpec((1, H), resident),                # b1
            pl.BlockSpec((H, H), resident),                # w2
            pl.BlockSpec((1, H), resident),                # b2
            pl.BlockSpec((H, H), resident),                # w3
            pl.BlockSpec((1, H), resident),                # b3
            pl.BlockSpec((H, 1), resident),                # w4
            pl.BlockSpec(memory_space=pltpu.MemorySpace.SMEM),  # b4 scalar
        ],
        out_specs=pl.BlockSpec((tb, 1), lambda i: (i, 0)),
        compiler_params=pltpu.CompilerParams(
            dimension_semantics=("parallel",),
            vmem_limit_bytes=32 * 1024 * 1024,
        ),
        cost_estimate=pl.CostEstimate(
            flops=flops, transcendentals=0, bytes_accessed=bytes_accessed),
    )(xb, w1b, b1, w2b, b2, w3b, b3, w4b, b4)

    return out[:B, 0]


def init_params(key, input_dim, hidden_dim):
    """Deterministic init mimicking nn.Linear shapes (stored transposed)."""
    ks = jax.random.split(key, 8)

    def linear(kw, kb, fan_in, fan_out):
        bound = 1.0 / jnp.sqrt(fan_in)
        # PyTorch stores weight as (out, in); we keep the (in, out) transpose.
        w = jax.random.uniform(kw, (fan_in, fan_out), jnp.float32, -bound, bound)
        b = jax.random.uniform(kb, (1, fan_out), jnp.float32, -bound, bound)
        return w, b

    w1, b1 = linear(ks[0], ks[1], input_dim, hidden_dim)
    w2, b2 = linear(ks[2], ks[3], hidden_dim, hidden_dim)
    w3, b3 = linear(ks[4], ks[5], hidden_dim, hidden_dim)
    w4, b4 = linear(ks[6], ks[7], hidden_dim, 1)
    return (w1, b1, w2, b2, w3, b3, w4, b4)


def reference_forward(x, params, compute_dtype=jnp.float32):
    """Pure-JAX reference; compute_dtype selects the matmul-input precision."""
    w1, b1, w2, b2, w3, b3, w4, b4 = params
    cast = lambda a: a.astype(compute_dtype)
    h = jnp.maximum(jnp.dot(cast(x), cast(w1), preferred_element_type=jnp.float32) + b1, 0.0)
    h = jnp.maximum(jnp.dot(cast(h), cast(w2), preferred_element_type=jnp.float32) + b2, 0.0)
    h = jnp.maximum(jnp.dot(cast(h), cast(w3), preferred_element_type=jnp.float32) + b3, 0.0)
    out = jnp.dot(cast(h), cast(w4), preferred_element_type=jnp.float32) + b4
    return out.squeeze(-1)


if __name__ == "__main__":
    key = jax.random.PRNGKey(0)
    k_x, k_p, k_x2 = jax.random.split(key, 3)

    input_dim, hidden_dim = 16, 128
    params = init_params(k_p, input_dim, hidden_dim)

    # Small, single-tile case.
    batch = 8
    x = jax.random.normal(k_x, (batch, input_dim), jnp.float32)
    y = jax.block_until_ready(feedforward_net(x, params))
    assert y.shape == (batch,)
    y_ref_bf16 = reference_forward(x, params, compute_dtype=jnp.bfloat16)
    y_ref_f32 = reference_forward(x, params, compute_dtype=jnp.float32)
    assert jnp.allclose(y, y_ref_bf16, atol=1e-3, rtol=1e-3)
    assert jnp.allclose(y, y_ref_f32, atol=5e-2, rtol=5e-2)

    # Multi-tile + ragged tail: exercises the batch grid and padding path.
    batch2 = 300
    x2 = jax.random.normal(k_x2, (batch2, input_dim), jnp.float32)
    y2 = jax.block_until_ready(feedforward_net(x2, params, tile_b=128))
    assert y2.shape == (batch2,)
    y2_ref = reference_forward(x2, params, compute_dtype=jnp.bfloat16)
    assert jnp.allclose(y2, y2_ref, atol=1e-3, rtol=1e-3)

    print("KERNEL_OK")
</pallas_src>

<mosaic_0001>
module attributes {stable_mosaic.version = 11 : i64} {
  func.func @ffnn_kernel(%arg0: i32, %arg1: memref<8x16xbf16, #tpu.memory_space<vmem>>, %arg2: memref<16x128xbf16, #tpu.memory_space<vmem>>, %arg3: memref<1x128xf32, #tpu.memory_space<vmem>>, %arg4: memref<128x128xbf16, #tpu.memory_space<vmem>>, %arg5: memref<1x128xf32, #tpu.memory_space<vmem>>, %arg6: memref<128x128xbf16, #tpu.memory_space<vmem>>, %arg7: memref<1x128xf32, #tpu.memory_space<vmem>>, %arg8: memref<128x1xbf16, #tpu.memory_space<vmem>>, %arg9: memref<1x1xf32, #tpu.memory_space<smem>>, %arg10: memref<8x1xf32, #tpu.memory_space<vmem>>) attributes {dimension_semantics = [#tpu.dimension_semantics<parallel>], iteration_bounds = array<i64: 1>, scalar_prefetch = 0 : i64, scratch_operands = 0 : i64, tpu.core_type = #tpu.core_type<tc>, window_params = [{transform_indices = @transform_0, window_bounds = array<i64: 8, 16>}, {pipeline_mode = #tpu.pipeline_mode<synchronous>, transform_indices = @transform_1, window_bounds = array<i64: 16, 128>}, {pipeline_mode = #tpu.pipeline_mode<synchronous>, transform_indices = @transform_2, window_bounds = array<i64: 1, 128>}, {pipeline_mode = #tpu.pipeline_mode<synchronous>, transform_indices = @transform_3, window_bounds = array<i64: 128, 128>}, {pipeline_mode = #tpu.pipeline_mode<synchronous>, transform_indices = @transform_4, window_bounds = array<i64: 1, 128>}, {pipeline_mode = #tpu.pipeline_mode<synchronous>, transform_indices = @transform_5, window_bounds = array<i64: 128, 128>}, {pipeline_mode = #tpu.pipeline_mode<synchronous>, transform_indices = @transform_6, window_bounds = array<i64: 1, 128>}, {pipeline_mode = #tpu.pipeline_mode<synchronous>, transform_indices = @transform_7, window_bounds = array<i64: 128, 1>}, {transform_indices = @transform_8, window_bounds = array<i64: 1, 1>}, {transform_indices = @transform_9, window_bounds = array<i64: 8, 1>}]} {
    %c0 = arith.constant 0 : index
    %c0_0 = arith.constant 0 : index
    %0 = vector.load %arg1[%c0, %c0_0] : memref<8x16xbf16, #tpu.memory_space<vmem>>, vector<8x16xbf16>
    %c0_1 = arith.constant 0 : index
    %c0_2 = arith.constant 0 : index
    %1 = vector.load %arg2[%c0_1, %c0_2] : memref<16x128xbf16, #tpu.memory_space<vmem>>, vector<16x128xbf16>
    %cst = arith.constant dense<0.000000e+00> : vector<8x128xf32>
    %2 = tpu.matmul %0, %1, %cst {dimension_numbers = #tpu.dot_dimension_numbers<[1], [0], [0], [1], [0, 0, 1, 1], [], []>} : vector<8x16xbf16>, vector<16x128xbf16>, vector<8x128xf32> -> vector<8x128xf32>
    %c0_3 = arith.constant 0 : index
    %c0_4 = arith.constant 0 : index
    %3 = vector.load %arg3[%c0_3, %c0_4] : memref<1x128xf32, #tpu.memory_space<vmem>>, vector<1x128xf32>
    %4 = vector.broadcast %3 : vector<1x128xf32> to vector<8x128xf32>
    %5 = arith.addf %2, %4 : vector<8x128xf32>
    %cst_5 = arith.constant 0.000000e+00 : f32
    %6 = vector.broadcast %cst_5 : f32 to vector<8x128xf32>
    %7 = arith.maximumf %5, %6 : vector<8x128xf32>
    %8 = arith.truncf %7 : vector<8x128xf32> to vector<8x128xbf16>
    %c0_6 = arith.constant 0 : index
    %c0_7 = arith.constant 0 : index
    %9 = vector.load %arg4[%c0_6, %c0_7] : memref<128x128xbf16, #tpu.memory_space<vmem>>, vector<128x128xbf16>
    %cst_8 = arith.constant dense<0.000000e+00> : vector<8x128xf32>
    %10 = tpu.matmul %8, %9, %cst_8 {dimension_numbers = #tpu.dot_dimension_numbers<[1], [0], [0], [1], [0, 0, 1, 1], [], []>} : vector<8x128xbf16>, vector<128x128xbf16>, vector<8x128xf32> -> vector<8x128xf32>
    %c0_9 = arith.constant 0 : index
    %c0_10 = arith.constant 0 : index
    %11 = vector.load %arg5[%c0_9, %c0_10] : memref<1x128xf32, #tpu.memory_space<vmem>>, vector<1x128xf32>
    %12 = vector.broadcast %11 : vector<1x128xf32> to vector<8x128xf32>
    %13 = arith.addf %10, %12 : vector<8x128xf32>
    %cst_11 = arith.constant 0.000000e+00 : f32
    %14 = vector.broadcast %cst_11 : f32 to vector<8x128xf32>
    %15 = arith.maximumf %13, %14 : vector<8x128xf32>
    %16 = arith.truncf %15 : vector<8x128xf32> to vector<8x128xbf16>
    %c0_12 = arith.constant 0 : index
    %c0_13 = arith.constant 0 : index
    %17 = vector.load %arg6[%c0_12, %c0_13] : memref<128x128xbf16, #tpu.memory_space<vmem>>, vector<128x128xbf16>
    %cst_14 = arith.constant dense<0.000000e+00> : vector<8x128xf32>
    %18 = tpu.matmul %16, %17, %cst_14 {dimension_numbers = #tpu.dot_dimension_numbers<[1], [0], [0], [1], [0, 0, 1, 1], [], []>} : vector<8x128xbf16>, vector<128x128xbf16>, vector<8x128xf32> -> vector<8x128xf32>
    %c0_15 = arith.constant 0 : index
    %c0_16 = arith.constant 0 : index
    %19 = vector.load %arg7[%c0_15, %c0_16] : memref<1x128xf32, #tpu.memory_space<vmem>>, vector<1x128xf32>
    %20 = vector.broadcast %19 : vector<1x128xf32> to vector<8x128xf32>
    %21 = arith.addf %18, %20 : vector<8x128xf32>
    %cst_17 = arith.constant 0.000000e+00 : f32
    %22 = vector.broadcast %cst_17 : f32 to vector<8x128xf32>
    %23 = arith.maximumf %21, %22 : vector<8x128xf32>
    %24 = arith.truncf %23 : vector<8x128xf32> to vector<8x128xbf16>
    %c0_18 = arith.constant 0 : index
    %c0_19 = arith.constant 0 : index
    %25 = vector.load %arg8[%c0_18, %c0_19] : memref<128x1xbf16, #tpu.memory_space<vmem>>, vector<128x1xbf16>
    %cst_20 = arith.constant dense<0.000000e+00> : vector<8x1xf32>
    %26 = tpu.matmul %24, %25, %cst_20 {dimension_numbers = #tpu.dot_dimension_numbers<[1], [0], [0], [1], [0, 0, 1, 1], [], []>} : vector<8x128xbf16>, vector<128x1xbf16>, vector<8x1xf32> -> vector<8x1xf32>
    %c0_21 = arith.constant 0 : index
    %c0_22 = arith.constant 0 : index
    %27 = memref.load %arg9[%c0_21, %c0_22] : memref<1x1xf32, #tpu.memory_space<smem>>
    %28 = vector.broadcast %27 : f32 to vector<8x1xf32>
    %29 = arith.addf %26, %28 : vector<8x1xf32>
    %c0_23 = arith.constant 0 : index
    %c0_24 = arith.constant 0 : index
    %30 = vector.load %arg10[%c0_23, %c0_24] : memref<8x1xf32, #tpu.memory_space<vmem>>, vector<8x1xf32>
    tpu.vector_store %arg10[%c0_23, %c0_24], %29 {strides = array<i32>} : memref<8x1xf32, #tpu.memory_space<vmem>>, vector<8x1xf32>,
    return
  }
  func.func @transform_0(%arg0: i32) -> (i32, i32) {
    %c0_i32 = arith.constant 0 : i32
    %c0_i32_0 = arith.constant 0 : i32
    return %arg0, %c0_i32 : i32, i32
  }
  func.func @transform_1(%arg0: i32) -> (i32, i32) {
    %c0_i32 = arith.constant 0 : i32
    %c0_i32_0 = arith.constant 0 : i32
    %c0_i32_1 = arith.constant 0 : i32
    return %c0_i32, %c0_i32_0 : i32, i32
  }
  func.func @transform_2(%arg0: i32) -> (i32, i32) {
    %c0_i32 = arith.constant 0 : i32
    %c0_i32_0 = arith.constant 0 : i32
    %c0_i32_1 = arith.constant 0 : i32
    return %c0_i32, %c0_i32_0 : i32, i32
  }
  func.func @transform_3(%arg0: i32) -> (i32, i32) {
    %c0_i32 = arith.constant 0 : i32
    %c0_i32_0 = arith.constant 0 : i32
    %c0_i32_1 = arith.constant 0 : i32
    return %c0_i32, %c0_i32_0 : i32, i32
  }
  func.func @transform_4(%arg0: i32) -> (i32, i32) {
    %c0_i32 = arith.constant 0 : i32
    %c0_i32_0 = arith.constant 0 : i32
    %c0_i32_1 = arith.constant 0 : i32
    return %c0_i32, %c0_i32_0 : i32, i32
  }
  func.func @transform_5(%arg0: i32) -> (i32, i32) {
    %c0_i32 = arith.constant 0 : i32
    %c0_i32_0 = arith.constant 0 : i32
    %c0_i32_1 = arith.constant 0 : i32
    return %c0_i32, %c0_i32_0 : i32, i32
  }
  func.func @transform_6(%arg0: i32) -> (i32, i32) {
    %c0_i32 = arith.constant 0 : i32
    %c0_i32_0 = arith.constant 0 : i32
    %c0_i32_1 = arith.constant 0 : i32
    return %c0_i32, %c0_i32_0 : i32, i32
  }
  func.func @transform_7(%arg0: i32) -> (i32, i32) {
    %c0_i32 = arith.constant 0 : i32
    %c0_i32_0 = arith.constant 0 : i32
    %c0_i32_1 = arith.constant 0 : i32
    return %c0_i32, %c0_i32_0 : i32, i32
  }
  func.func @transform_8(%arg0: i32) -> (i32, i32) {
    %c0_i32 = arith.constant 0 : i32
    %c0_i32_0 = arith.constant 0 : i32
    %c0_i32_1 = arith.constant 0 : i32
    return %c0_i32, %c0_i32_0 : i32, i32
  }
  func.func @transform_9(%arg0: i32) -> (i32, i32) {
    %c0_i32 = arith.constant 0 : i32
    %c0_i32_0 = arith.constant 0 : i32
    return %arg0, %c0_i32 : i32, i32
  }
}

</mosaic_0001>

<bundles_post_ra>
// kernel: feedforward_net.1
= control target key start
LH: loop header
LB: loop body
LE: loop exit
PB: predicated region body
PF: predicated region fallthrough
CT: control target
= control target key end

     0   :  { %vm47_vm0 = vcmask 130048   ;;  %vm311_vm1 = vcmask 7168   ;;  %s589_s1 = inlined_call_operand.vmem [shape: bf16[16,128], index: 1, kind: input, shape index: {}]   ;;  %s590_s0 = inlined_call_operand.vmem [shape: bf16[8,16], index: 0, kind: input, shape index: {}]   ;;  %s591_s3 = inlined_call_operand.vmem [shape: bf16[128,128], index: 3, kind: input, shape index: {}]   ;;  %s592_s2 = inlined_call_operand.vmem [shape: f32[1,128], index: 2, kind: input, shape index: {}]   ;;  %s593_s4 = inlined_call_operand.vmem [shape: f32[1,128], index: 4, kind: input, shape index: {}]   ;;  %s594_s5 = inlined_call_operand.vmem [shape: bf16[128,128], index: 5, kind: input, shape index: {}]   ;;  %s595_s6 = inlined_call_operand.vmem [shape: f32[1,128], index: 6, kind: input, shape index: {}]   ;;  %s596_s7 = inlined_call_operand.vmem [shape: bf16[128,1], index: 7, kind: input, shape index: {}]   ;;  %s597_s8 = inlined_call_operand.<no memory space> [shape: f32[1,1], index: 8, kind: input, shape index: {}]   ;;  %s598_s9 = inlined_call_operand.vmem [shape: f32[8,1], index: 9, kind: output, shape index: {}]  }
   0x1   :  { %v418_v0 = vld [vmem:[%s589_s1] sm:$0xff]  ;;  %v426_v1 = vld [vmem:[%s591_s3 + $0x38] sm:$0xff]  ;;  %v425_v3 = vld [vmem:[%s591_s3 + $0x30] sm:$0xff]  ;;  %v249_v44 = vstv %s597_s8 }
   0x2   :  { %58 = vmatpush.bf16.msra.mxu0 %v418_v0  ;;  %v34_v2 = vld [vmem:[%s590_s0] sm:$0xf]  ;;  %134 = vmatpush.bf16.msra.mxu1 %v426_v1  ;;  %v424_v4 = vld [vmem:[%s591_s3 + $0x28] sm:$0xff]  ;;  %v422_v6 = vld [vmem:[%s591_s3 + $0x18] sm:$0xff] }
   0x3   :  { %v423_v5 = vld [vmem:[%s591_s3 + $0x20] sm:$0xff]  ;;  %v421_v7 = vld [vmem:[%s591_s3 + $0x10] sm:$0xff]  ;;  %v420_v8 = vld [vmem:[%s591_s3 + $0x8] sm:$0xff] }
   0x4   :  { %v419_v9 = vld [vmem:[%s591_s3] sm:$0xff]  ;;  %v434_v10 = vld [vmem:[%s594_s5 + $0x38] sm:$0xff]  ;;  %v433_v11 = vld [vmem:[%s594_s5 + $0x30] sm:$0xff] }
   0x5   :  { %321 = vmatmul.msk.bf16.vlgmr.msra.gmra.mxu0 %vm47_vm0, %v34_v2  ;;  %217 = vmatpush.bf16.msra.mxu2 %v434_v10  ;;  %v432_v12 = vld [vmem:[%s594_s5 + $0x28] sm:$0xff]  ;;  %v431_v13 = vld [vmem:[%s594_s5 + $0x20] sm:$0xff]  ;;  %v430_v14 = vld [vmem:[%s594_s5 + $0x18] sm:$0xff] }
   0x6   :  { %135 = vmatpush.bf16.msra.mxu1 %v425_v3  ;;  %v429_v15 = vld [vmem:[%s594_s5 + $0x10] sm:$0xff]  ;;  %v443_v16 = vld [vmem:[%s592_s2] ss:$0 sm:$0xff]  ;;  %v428_v22 = vld [vmem:[%s594_s5 + $0x8] sm:$0xff] }
   0x7   :  { %v427_v23 = vld [vmem:[%s594_s5] sm:$0xff]  ;;  %v442_v24 = vld [vmem:[%s596_s7 + $0x38] sm:$0xff]  ;;  %v441_v25 = vld [vmem:[%s596_s7 + $0x30] sm:$0xff] }
   0x8   :  { %298 = vmatpush.bf16.msra.mxu3 %v442_v24  ;;  %v440_v26 = vld [vmem:[%s596_s7 + $0x28] sm:$0xff]  ;;  %v439_v27 = vld [vmem:[%s596_s7 + $0x20] sm:$0xff]  ;;  %v438_v28 = vld [vmem:[%s596_s7 + $0x18] sm:$0xff] }
   0x9   :  { %218 = vmatpush.bf16.msra.mxu2 %v433_v11  ;;  %v437_v29 = vld [vmem:[%s596_s7 + $0x10] sm:$0xff]  ;;  %v444_v30 = vld [vmem:[%s593_s4] ss:$0 sm:$0xff]  ;;  %v436_v36 = vld [vmem:[%s596_s7 + $0x8] sm:$0xff] }
   0xa   :  { %136 = vmatpush.bf16.msra.mxu1 %v424_v4  ;;  %v435_v37 = vld [vmem:[%s596_s7] sm:$0xff] }
   0xb   :  { %v445_v38 = vld [vmem:[%s595_s6] ss:$0 sm:$0xff] }
   0xc   :  { %299 = vmatpush.bf16.msra.mxu3 %v441_v25 }
   0xd   :  { %219 = vmatpush.bf16.msra.mxu2 %v432_v12 }
   0xe   :  { %137 = vmatpush.bf16.msra.mxu1 %v423_v5 }
  0x10   :  { %300 = vmatpush.bf16.msra.mxu3 %v440_v26 }
  0x11   :  { %220 = vmatpush.bf16.msra.mxu2 %v431_v13 }
  0x12   :  { %138 = vmatpush.bf16.msra.mxu1 %v422_v6 }
  0x14   :  { %301 = vmatpush.bf16.msra.mxu3 %v439_v27 }
  0x15   :  { %221 = vmatpush.bf16.msra.mxu2 %v430_v14 }
  0x16   :  { %139 = vmatpush.bf16.msra.mxu1 %v421_v7 }
  0x18   :  { %302 = vmatpush.bf16.msra.mxu3 %v438_v28 }
  0x19   :  { %222 = vmatpush.bf16.msra.mxu2 %v429_v15 }
  0x1a   :  { %140 = vmatpush.bf16.msra.mxu1 %v420_v8 }
  0x1c   :  { %303 = vmatpush.bf16.msra.mxu3 %v437_v29 }
  0x1d   :  { %223 = vmatpush.bf16.msra.mxu2 %v428_v22 }
  0x1e   :  { %141 = vmatpush.bf16.msra.mxu1 %v419_v9 }
  0x20   :  { %304 = vmatpush.bf16.msra.mxu3 %v436_v36 }
  0x21   :  { %224 = vmatpush.bf16.msra.mxu2 %v427_v23 }
  0x24   :  { %305 = vmatpush.bf16.msra.mxu3 %v435_v37 }
  0x82   :  { %v60_v17 = vpop.f32.mrf.mxu0 }
  0x83   :  { %v61_v18 = vadd.f32 %v443_v16, %v60_v17 }
  0x85   :  { %v64_v19 = vmax.f32 %v61_v18, 0.0 }
  0x87   :  { %v65_v20 = vpack.c.bf16 %v64_v19, %v64_v19 }
  0x89   :  { %142 = vmatmul.bf16.vlgmr.msra.gmra.mxu1 %v65_v20 }
  0x8a   :  { %v62_v21 = vpop.f32.mrf.mxu0 }
 0x106   :  { %v143_v31 = vpop.f32.mrf.mxu1 }
 0x107   :  { %v144_v32 = vadd.f32 %v444_v30, %v143_v31 }
 0x109   :  { %v147_v33 = vmax.f32 %v144_v32, 0.0 }
 0x10b   :  { %v148_v34 = vpack.c.bf16 %v147_v33, %v147_v33 }
 0x10d   :  { %225 = vmatmul.bf16.vlgmr.msra.gmra.mxu2 %v148_v34 }
 0x10e   :  { %v145_v35 = vpop.f32.mrf.mxu1 }
 0x190   :  { %v226_v39 = vpop.f32.mrf.mxu2 }
 0x191   :  { %v227_v40 = vadd.f32 %v445_v38, %v226_v39 }
 0x193   :  { %v230_v41 = vmax.f32 %v227_v40, 0.0 }
 0x195   :  { %v231_v42 = vpack.c.bf16 %v230_v41, %v230_v41 }
 0x197   :  { %306 = vmatmul.bf16.vlgmr.msra.gmra.mxu3 %v231_v42 }
 0x198   :  { %v228_v43 = vpop.f32.mrf.mxu2 }
 0x21a   :  { %v307_v45 = vpop.f32.mrf.mxu3 }
 0x21b   :  { %v308_v46 = vadd.f32 %v307_v45, %v249_v44 }
 0x21d   :  { %312 = vst.msk [vmem:[%s598_s9] sm:$0xff] %vm311_vm1, %v308_v46 }
 0x222   :  { %v309_v47 = vpop.f32.mrf.mxu3 }

</bundles_post_ra>
